<compile_context>
chip_gen: v7x
topology: tpu7x:2x2x1
jax: 0.10.0
libtpu: 0.0.40
codegen_flags: <defaults>
</compile_context>

<pallas_src>
import functools

import jax
import jax.numpy as jnp
from jax.experimental import pallas as pl
from jax.experimental.pallas import tpu as pltpu


_CHUNK = 1024          # inner compute-chunk rows (bounds live intermediates)
_MIN_STEP_ROWS = 2048  # rows/step considered "enough" to amortize step overhead


def _round_up(x, m):
    return (x + m - 1) // m * m


def critic_kernel(pi_ref, act_ref,
                  w1p_ref, w1a_ref, b1_ref,
                  w2_ref, b2_ref,
                  w3_ref, b3_ref,
                  out_ref, *, chunk, n_chunks):
    hid = w2_ref.shape[0]

    # Weights/biases are VMEM-resident; hoist loads and the lane-broadcasts of
    # the bias columns out of the chunk loop (JAX does not CSE broadcasts).
    w1p = w1p_ref[...]                                 # (hid, dpi)   bf16
    w1a = w1a_ref[...]                                 # (hid, dact)  bf16, 1/L folded
    w2 = w2_ref[...]                                   # (hid, hid)   bf16 (W2^T)
    w3 = w3_ref[...]                                   # (1,  hid)    bf16 (W3^T)
    b1 = jnp.broadcast_to(b1_ref[...], (hid, chunk))   # (hid, chunk) f32
    b2 = jnp.broadcast_to(b2_ref[...], (hid, chunk))   # (hid, chunk) f32
    b3 = b3_ref[0, 0]                                  # scalar (SMEM)

    def chunk_body(c):
        off = c * chunk
        if not isinstance(off, int):
            off = pl.multiple_of(off, chunk)
        x_pi = pi_ref[pl.ds(off, chunk), :]            # (chunk, dpi)  bf16
        x_ac = act_ref[pl.ds(off, chunk), :]           # (chunk, dact) bf16

        # Layer 1 (transposed, split): hT = W1p^T @ pi^T + (W1a/L)^T @ act^T.
        # NT-form MXU matmuls (contract last dims), f32 accumulation.
        h = jnp.einsum('hd,bd->hb', w1p, x_pi,
                       preferred_element_type=jnp.float32)
        h = h + jnp.einsum('hd,bd->hb', w1a, x_ac,
                           preferred_element_type=jnp.float32)
        h = jnp.maximum(h + b1, 0.0)

        # Layer 2: (hid, hid) @ (hid, chunk); batch stays on lanes.
        h = jnp.dot(w2, h.astype(w2.dtype),
                    preferred_element_type=jnp.float32)
        h = jnp.maximum(h + b2, 0.0)

        # Layer 3: (1, hid) @ (hid, chunk) -> q produced lane-dense directly.
        q = jnp.dot(w3, h.astype(w3.dtype),
                    preferred_element_type=jnp.float32) + b3
        out_ref[:, pl.ds(off, chunk)] = q.astype(out_ref.dtype)

    if n_chunks == 1:
        chunk_body(0)
    else:
        @pl.loop(0, n_chunks)
        def _(c):
            chunk_body(c)


def critic_prepare_params(params, act_limit, dpi, compute_dtype=jnp.bfloat16):
    """One-time parameter prep: split W1 at the concat boundary, fold 1/act_limit
    into the action half, transpose into the feature-major (lane = batch)
    orientation used by the kernel, cast matmul weights to the streaming dtype,
    keep biases in f32 as columns, keep the scalar output bias for SMEM."""
    w1, b1, w2, b2, w3, b3 = params
    w1p_t = jnp.asarray(w1[:dpi, :].T, compute_dtype)                       # (hid, dpi)
    w1a_t = jnp.asarray((w1[dpi:, :] / float(act_limit)).T, compute_dtype)  # (hid, dact)
    return (w1p_t, w1a_t,
            jnp.asarray(b1.reshape(-1, 1), jnp.float32),                    # (hid, 1)
            jnp.asarray(w2.T, compute_dtype),                               # (hid, hid)
            jnp.asarray(b2.reshape(-1, 1), jnp.float32),                    # (hid, 1)
            jnp.asarray(w3.T, compute_dtype),                               # (1, hid)
            jnp.asarray(b3.reshape(1, 1), jnp.float32))                     # (1, 1)


def critic_forward(pi_inputs, actions, prepped, *,
                   batch_tile=16384, compute_dtype=jnp.bfloat16):
    """Pallas-backed Critic forward. Returns q_values of shape (B,)."""
    w1p_t, w1a_t, b1c, w2_t, b2c, w3r, b3 = prepped
    B, dpi = pi_inputs.shape
    dact = actions.shape[-1]
    hid = w2_t.shape[0]
    assert w1p_t.shape == (hid, dpi) and w1a_t.shape == (hid, dact), \
        "prepped params do not match the pi/action feature split"

    # ---- batch tiling ----
    # Clamp the user tile to a multiple of 8 (BlockSpec (8,128) rule).
    batch_tile = max(8, _round_up(int(batch_tile), 8))
    b8 = _round_up(B, 8)
    tb = min(batch_tile, b8)
    # Large batches: force >=2 (>=4) grid steps so the "parallel" batch axis
    # feeds both v7x TensorCores and keeps the DMA pipeline busy.
    if b8 >= 2 * _MIN_STEP_ROWS:
        target_steps = 4 if b8 >= 4 * _MIN_STEP_ROWS else 2
        tb = min(tb, _round_up(pl.cdiv(b8, target_steps), 8))
    # Align the tile to the inner compute chunk.
    if tb > _CHUNK:
        tb = _round_up(tb, _CHUNK)
    chunk = min(tb, _CHUNK)
    n_chunks = tb // chunk
    bp = _round_up(B, tb)
    n_steps = bp // tb

    # Stream inputs as bf16 (halves HBM bytes of the dominant streams); pad the
    # batch up to the tile grid.
    pi = pi_inputs if pi_inputs.dtype == compute_dtype else pi_inputs.astype(compute_dtype)
    act = actions if actions.dtype == compute_dtype else actions.astype(compute_dtype)
    if bp != B:
        pi = jnp.pad(pi, ((0, bp - B), (0, 0)))
        act = jnp.pad(act, ((0, bp - B), (0, 0)))

    row = lambda i: (i, 0)       # streamed per batch tile
    const = lambda i: (0, 0)     # VMEM-resident across all grid steps

    kernel = functools.partial(critic_kernel, chunk=chunk, n_chunks=n_chunks)

    out = pl.pallas_call(
        kernel,
        out_shape=jax.ShapeDtypeStruct((n_steps, 1, tb), jnp.float32),
        grid=(n_steps,),
        in_specs=[
            pl.BlockSpec((tb, dpi), row),        # pi tile        (bf16, streamed)
            pl.BlockSpec((tb, dact), row),       # action tile    (bf16, streamed)
            pl.BlockSpec((hid, dpi), const),     # W1p^T          (resident)
            pl.BlockSpec((hid, dact), const),    # (W1a/L)^T      (resident)
            pl.BlockSpec((hid, 1), const),       # b1 column      (resident, f32)
            pl.BlockSpec((hid, hid), const),     # W2^T           (resident)
            pl.BlockSpec((hid, 1), const),       # b2 column      (resident, f32)
            pl.BlockSpec((1, hid), const),       # W3^T row       (resident)
            pl.BlockSpec(memory_space=pltpu.MemorySpace.SMEM),   # b3 scalar
        ],
        # Lane-dense output: one (1, tb) row per grid step -> full-lane stores
        # and a contiguous writeback DMA.
        out_specs=pl.BlockSpec((None, 1, tb), lambda i: (i, 0, 0)),
        compiler_params=pltpu.CompilerParams(
            dimension_semantics=("parallel",),
            vmem_limit_bytes=64 * 1024 * 1024,
        ),
    )(pi, act, w1p_t, w1a_t, b1c, w2_t, b2c, w3r, b3)

    # .squeeze() as in the PyTorch module (drop the padded rows first).
    return out.reshape(bp)[:B]


# ----------------------------- references -----------------------------------

def critic_reference_f32(pi_inputs, actions, params, act_limit):
    """Plain-JAX f32 reference with the original module's semantics."""
    w1, b1, w2, b2, w3, b3 = params
    x = jnp.concatenate([pi_inputs, actions / act_limit], axis=-1)
    h = jnp.maximum(x @ w1 + b1, 0.0)
    h = jnp.maximum(h @ w2 + b2, 0.0)
    return jnp.squeeze(h @ w3 + b3)


def critic_reference_prepped(pi_inputs, actions, prepped):
    """Reference mirroring the kernel's exact numerics policy (bf16 matmul
    operands, f32 accumulation, folded action scale, transposed orientation)."""
    w1p_t, w1a_t, b1c, w2_t, b2c, w3r, b3 = prepped
    pi16 = pi_inputs.astype(w1p_t.dtype)
    a16 = actions.astype(w1a_t.dtype)
    h = (jnp.einsum('hd,bd->hb', w1p_t, pi16, preferred_element_type=jnp.float32)
         + jnp.einsum('hd,bd->hb', w1a_t, a16, preferred_element_type=jnp.float32))
    h = jnp.maximum(h + b1c, 0.0)
    h = jnp.dot(w2_t, h.astype(w2_t.dtype), preferred_element_type=jnp.float32)
    h = jnp.maximum(h + b2c, 0.0)
    q = jnp.dot(w3r, h.astype(w3r.dtype), preferred_element_type=jnp.float32) + b3[0, 0]
    return q[0]


def init_params(key, input_dim, hid_size, n_hids):
    """Deterministic synthetic init for the MLP [input_dim, hid*n_hids, 1]."""
    dims = [input_dim] + [hid_size] * n_hids + [1]
    keys = jax.random.split(key, len(dims) - 1)
    params = []
    for k, (din, dout) in zip(keys, zip(dims[:-1], dims[1:])):
        kw, kb = jax.random.split(k)
        bound = 1.0 / jnp.sqrt(din)
        w = jax.random.uniform(kw, (din, dout), jnp.float32, -bound, bound)
        b = jax.random.uniform(kb, (1, dout), jnp.float32, -bound, bound)
        params += [w, b]
    return tuple(params)


if __name__ == "__main__":
    # env_params / args (small, consistent with the module's forward)
    obs_dim, goal_dim, act_dim = 10, 3, 4
    act_limit = 2.0
    hid_size, n_hids = 32, 2
    dpi = obs_dim + goal_dim
    input_dim = dpi + act_dim

    key = jax.random.PRNGKey(0)
    k_param, k1, k2, k3, k4, k5, k6 = jax.random.split(key, 7)
    params = init_params(k_param, input_dim, hid_size, n_hids)
    prepped = critic_prepare_params(params, act_limit, dpi)

    # --- case 1: small batch, single grid step, single inner chunk ---
    batch = 8
    pi_inputs = jax.random.normal(k1, (batch, dpi), jnp.float32)
    actions = jax.random.uniform(k2, (batch, act_dim), jnp.float32,
                                 -act_limit, act_limit)
    q = jax.block_until_ready(critic_forward(pi_inputs, actions, prepped))
    assert q.shape == (batch,)
    q_match = critic_reference_prepped(pi_inputs, actions, prepped)
    q_f32 = critic_reference_f32(pi_inputs, actions, params, act_limit)
    assert jnp.allclose(q, q_match, atol=2e-3, rtol=2e-3), (q, q_match)
    assert jnp.allclose(q, q_f32, atol=5e-2, rtol=5e-2), (q, q_f32)

    # --- case 2: non-multiple batch + explicit small tile -> grid > 1,
    #             exercises padding and the pipelined/parallel batch axis ---
    batch2 = 40
    pi2 = jax.random.normal(k3, (batch2, dpi), jnp.float32)
    act2 = jax.random.uniform(k4, (batch2, act_dim), jnp.float32,
                              -act_limit, act_limit)
    q2 = jax.block_until_ready(critic_forward(pi2, act2, prepped, batch_tile=16))
    assert q2.shape == (batch2,)
    assert jnp.allclose(q2, critic_reference_prepped(pi2, act2, prepped),
                        atol=2e-3, rtol=2e-3)
    assert jnp.allclose(q2, critic_reference_f32(pi2, act2, params, act_limit),
                        atol=5e-2, rtol=5e-2)

    # --- case 3: batch big enough to trigger the >=2-grid-step split and the
    #             inner chunk loop (tb=3072, chunk=1024, 2 grid steps) ---
    batch3 = 4100
    pi3 = jax.random.normal(k5, (batch3, dpi), jnp.float32)
    act3 = jax.random.uniform(k6, (batch3, act_dim), jnp.float32,
                              -act_limit, act_limit)
    q3 = jax.block_until_ready(critic_forward(pi3, act3, prepped))
    assert q3.shape == (batch3,)
    assert jnp.allclose(q3, critic_reference_prepped(pi3, act3, prepped),
                        atol=2e-3, rtol=2e-3)
    assert jnp.allclose(q3, critic_reference_f32(pi3, act3, params, act_limit),
                        atol=5e-2, rtol=5e-2)

    print("KERNEL_OK")
</pallas_src>

<mosaic_0001>
module attributes {stable_mosaic.version = 11 : i64} {
  func.func @critic_kernel(%arg0: i32, %arg1: memref<8x13xbf16, #tpu.memory_space<vmem>>, %arg2: memref<8x4xbf16, #tpu.memory_space<vmem>>, %arg3: memref<32x13xbf16, #tpu.memory_space<vmem>>, %arg4: memref<32x4xbf16, #tpu.memory_space<vmem>>, %arg5: memref<32x1xf32, #tpu.memory_space<vmem>>, %arg6: memref<32x32xbf16, #tpu.memory_space<vmem>>, %arg7: memref<32x1xf32, #tpu.memory_space<vmem>>, %arg8: memref<1x32xbf16, #tpu.memory_space<vmem>>, %arg9: memref<1x1xf32, #tpu.memory_space<smem>>, %arg10: memref<1x1x8xf32, #tpu.memory_space<vmem>>) attributes {dimension_semantics = [#tpu.dimension_semantics<parallel>], iteration_bounds = array<i64: 1>, scalar_prefetch = 0 : i64, scratch_operands = 0 : i64, tpu.core_type = #tpu.core_type<tc>, window_params = [{transform_indices = @transform_0, window_bounds = array<i64: 8, 13>}, {transform_indices = @transform_1, window_bounds = array<i64: 8, 4>}, {pipeline_mode = #tpu.pipeline_mode<synchronous>, transform_indices = @transform_2, window_bounds = array<i64: 32, 13>}, {pipeline_mode = #tpu.pipeline_mode<synchronous>, transform_indices = @transform_3, window_bounds = array<i64: 32, 4>}, {pipeline_mode = #tpu.pipeline_mode<synchronous>, transform_indices = @transform_4, window_bounds = array<i64: 32, 1>}, {pipeline_mode = #tpu.pipeline_mode<synchronous>, transform_indices = @transform_5, window_bounds = array<i64: 32, 32>}, {pipeline_mode = #tpu.pipeline_mode<synchronous>, transform_indices = @transform_6, window_bounds = array<i64: 32, 1>}, {pipeline_mode = #tpu.pipeline_mode<synchronous>, transform_indices = @transform_7, window_bounds = array<i64: 1, 32>}, {transform_indices = @transform_8, window_bounds = array<i64: 1, 1>}, {transform_indices = @transform_9, window_bounds = array<i64: 1, 1, 8>}]} {
    %c0 = arith.constant 0 : index
    %c0_0 = arith.constant 0 : index
    %0 = vector.load %arg3[%c0, %c0_0] : memref<32x13xbf16, #tpu.memory_space<vmem>>, vector<32x13xbf16>
    %c0_1 = arith.constant 0 : index
    %c0_2 = arith.constant 0 : index
    %1 = vector.load %arg4[%c0_1, %c0_2] : memref<32x4xbf16, #tpu.memory_space<vmem>>, vector<32x4xbf16>
    %c0_3 = arith.constant 0 : index
    %c0_4 = arith.constant 0 : index
    %2 = vector.load %arg6[%c0_3, %c0_4] : memref<32x32xbf16, #tpu.memory_space<vmem>>, vector<32x32xbf16>
    %c0_5 = arith.constant 0 : index
    %c0_6 = arith.constant 0 : index
    %3 = vector.load %arg8[%c0_5, %c0_6] : memref<1x32xbf16, #tpu.memory_space<vmem>>, vector<1x32xbf16>
    %c0_7 = arith.constant 0 : index
    %c0_8 = arith.constant 0 : index
    %4 = vector.load %arg5[%c0_7, %c0_8] : memref<32x1xf32, #tpu.memory_space<vmem>>, vector<32x1xf32>
    %5 = vector.shape_cast %4 : vector<32x1xf32> to vector<32x1xf32>
    %6 = vector.broadcast %5 : vector<32x1xf32> to vector<32x8xf32>
    %c0_9 = arith.constant 0 : index
    %c0_10 = arith.constant 0 : index
    %7 = vector.load %arg7[%c0_9, %c0_10] : memref<32x1xf32, #tpu.memory_space<vmem>>, vector<32x1xf32>
    %8 = vector.shape_cast %7 : vector<32x1xf32> to vector<32x1xf32>
    %9 = vector.broadcast %8 : vector<32x1xf32> to vector<32x8xf32>
    %c0_11 = arith.constant 0 : index
    %c0_12 = arith.constant 0 : index
    %10 = memref.load %arg9[%c0_11, %c0_12] : memref<1x1xf32, #tpu.memory_space<smem>>
    %c0_13 = arith.constant 0 : index
    %c0_14 = arith.constant 0 : index
    %11 = vector.load %arg1[%c0_13, %c0_14] : memref<8x13xbf16, #tpu.memory_space<vmem>>, vector<8x13xbf16>
    %c0_15 = arith.constant 0 : index
    %c0_16 = arith.constant 0 : index
    %12 = vector.load %arg2[%c0_15, %c0_16] : memref<8x4xbf16, #tpu.memory_space<vmem>>, vector<8x4xbf16>
    "tpu.trace_start"() <{level = 10 : i32, message = "hd,bd->hb"}> : () -> ()
    %cst = arith.constant dense<0.000000e+00> : vector<32x8xf32>
    %13 = tpu.matmul %0, %11, %cst {dimension_numbers = #tpu.dot_dimension_numbers<[1], [1], [0], [0], [0, 0, 1, 0], [], []>} : vector<32x13xbf16>, vector<8x13xbf16>, vector<32x8xf32> -> vector<32x8xf32>
    %cst_17 = arith.constant dense<0.000000e+00> : vector<32x8xf32>
    %14 = tpu.matmul %1, %12, %cst_17 {dimension_numbers = #tpu.dot_dimension_numbers<[1], [1], [0], [0], [0, 0, 1, 0], [], []>} : vector<32x4xbf16>, vector<8x4xbf16>, vector<32x8xf32> -> vector<32x8xf32>
    "tpu.trace_stop"() : () -> ()
    %15 = arith.addf %13, %14 : vector<32x8xf32>
    %16 = arith.addf %15, %6 : vector<32x8xf32>
    %cst_18 = arith.constant 0.000000e+00 : f32
    %17 = vector.broadcast %cst_18 : f32 to vector<32x8xf32>
    %18 = arith.maximumf %16, %17 : vector<32x8xf32>
    %19 = arith.truncf %18 : vector<32x8xf32> to vector<32x8xbf16>
    %cst_19 = arith.constant dense<0.000000e+00> : vector<32x8xf32>
    %20 = tpu.matmul %2, %19, %cst_19 {dimension_numbers = #tpu.dot_dimension_numbers<[1], [0], [0], [1], [0, 0, 1, 1], [], []>} : vector<32x32xbf16>, vector<32x8xbf16>, vector<32x8xf32> -> vector<32x8xf32>
    %21 = arith.addf %20, %9 : vector<32x8xf32>
    %cst_20 = arith.constant 0.000000e+00 : f32
    %22 = vector.broadcast %cst_20 : f32 to vector<32x8xf32>
    %23 = arith.maximumf %21, %22 : vector<32x8xf32>
    %24 = arith.truncf %23 : vector<32x8xf32> to vector<32x8xbf16>
    %cst_21 = arith.constant dense<0.000000e+00> : vector<1x8xf32>
    %25 = tpu.matmul %3, %24, %cst_21 {dimension_numbers = #tpu.dot_dimension_numbers<[1], [0], [0], [1], [0, 0, 1, 1], [], []>} : vector<1x32xbf16>, vector<32x8xbf16>, vector<1x8xf32> -> vector<1x8xf32>
    %26 = vector.broadcast %10 : f32 to vector<1x8xf32>
    %27 = arith.addf %25, %26 : vector<1x8xf32>
    %c0_22 = arith.constant 0 : index
    %c0_23 = arith.constant 0 : index
    %c0_24 = arith.constant 0 : index
    %28 = vector.load %arg10[%c0_22, %c0_23, %c0_24] : memref<1x1x8xf32, #tpu.memory_space<vmem>>, vector<1x1x8xf32>
    %29 = vector.shape_cast %28 : vector<1x1x8xf32> to vector<1x8xf32>
    %30 = vector.shape_cast %27 : vector<1x8xf32> to vector<1x1x8xf32>
    tpu.vector_store %arg10[%c0_22, %c0_23, %c0_24], %30 {strides = array<i32>} : memref<1x1x8xf32, #tpu.memory_space<vmem>>, vector<1x1x8xf32>,
    return
  }
  func.func @transform_0(%arg0: i32) -> (i32, i32) {
    %c0_i32 = arith.constant 0 : i32
    %c0_i32_0 = arith.constant 0 : i32
    return %arg0, %c0_i32 : i32, i32
  }
  func.func @transform_1(%arg0: i32) -> (i32, i32) {
    %c0_i32 = arith.constant 0 : i32
    %c0_i32_0 = arith.constant 0 : i32
    return %arg0, %c0_i32 : i32, i32
  }
  func.func @transform_2(%arg0: i32) -> (i32, i32) {
    %c0_i32 = arith.constant 0 : i32
    %c0_i32_0 = arith.constant 0 : i32
    %c0_i32_1 = arith.constant 0 : i32
    return %c0_i32, %c0_i32_0 : i32, i32
  }
  func.func @transform_3(%arg0: i32) -> (i32, i32) {
    %c0_i32 = arith.constant 0 : i32
    %c0_i32_0 = arith.constant 0 : i32
    %c0_i32_1 = arith.constant 0 : i32
    return %c0_i32, %c0_i32_0 : i32, i32
  }
  func.func @transform_4(%arg0: i32) -> (i32, i32) {
    %c0_i32 = arith.constant 0 : i32
    %c0_i32_0 = arith.constant 0 : i32
    %c0_i32_1 = arith.constant 0 : i32
    return %c0_i32, %c0_i32_0 : i32, i32
  }
  func.func @transform_5(%arg0: i32) -> (i32, i32) {
    %c0_i32 = arith.constant 0 : i32
    %c0_i32_0 = arith.constant 0 : i32
    %c0_i32_1 = arith.constant 0 : i32
    return %c0_i32, %c0_i32_0 : i32, i32
  }
  func.func @transform_6(%arg0: i32) -> (i32, i32) {
    %c0_i32 = arith.constant 0 : i32
    %c0_i32_0 = arith.constant 0 : i32
    %c0_i32_1 = arith.constant 0 : i32
    return %c0_i32, %c0_i32_0 : i32, i32
  }
  func.func @transform_7(%arg0: i32) -> (i32, i32) {
    %c0_i32 = arith.constant 0 : i32
    %c0_i32_0 = arith.constant 0 : i32
    %c0_i32_1 = arith.constant 0 : i32
    return %c0_i32, %c0_i32_0 : i32, i32
  }
  func.func @transform_8(%arg0: i32) -> (i32, i32) {
    %c0_i32 = arith.constant 0 : i32
    %c0_i32_0 = arith.constant 0 : i32
    %c0_i32_1 = arith.constant 0 : i32
    return %c0_i32, %c0_i32_0 : i32, i32
  }
  func.func @transform_9(%arg0: i32) -> (i32, i32, i32) {
    %c0_i32 = arith.constant 0 : i32
    %c0_i32_0 = arith.constant 0 : i32
    %c0_i32_1 = arith.constant 0 : i32
    return %arg0, %c0_i32, %c0_i32_0 : i32, i32, i32
  }
}

</mosaic_0001>

<bundles_post_ra>
// kernel: tpu_custom_call.1
= control target key start
LH: loop header
LB: loop body
LE: loop exit
PB: predicated region body
PF: predicated region fallthrough
CT: control target
= control target key end

     0   :  { %15 = vsyncpa [#allocation4], 0  ;;  %s978_s0 = inlined_call_operand.hbm [shape: bf16[8,13], index: 0, kind: input, shape index: {}]   ;;  %s979_s1 = inlined_call_operand.hbm [shape: bf16[8,4], index: 1, kind: input, shape index: {}]   ;;  %s980_s2 = inlined_call_operand.hbm [shape: bf16[32,13], index: 2, kind: input, shape index: {}]   ;;  %s981_s3 = inlined_call_operand.hbm [shape: bf16[32,4], index: 3, kind: input, shape index: {}]   ;;  %s982_s4 = inlined_call_operand.hbm [shape: f32[32,1], index: 4, kind: input, shape index: {}]   ;;  %s983_s5 = inlined_call_operand.hbm [shape: bf16[32,32], index: 5, kind: input, shape index: {}]   ;;  %s984_s6 = inlined_call_operand.hbm [shape: f32[32,1], index: 6, kind: input, shape index: {}]   ;;  %s985_s7 = inlined_call_operand.hbm [shape: bf16[1,32], index: 7, kind: input, shape index: {}]   ;;  %s986_s8 = inlined_call_operand.<no memory space> [shape: f32[1,1], index: 8, kind: input, shape index: {}]   ;;  %s987_s9 = inlined_call_operand.hbm [shape: f32[1,1,8], index: 9, kind: output, shape index: {}]  }
   0x1   :  { %16 = vsyncpa [#allocation7], 0 }
   0x2   :  { %17 = vsyncpa [#allocation10], 0 }
   0x3   :  { %18 = vsyncpa [#allocation13], 0 }
   0x4   :  { %19 = vsyncpa [#allocation16], 0 }
   0x5   :  { %20 = vsyncpa [#allocation5], 0  ;;  %s781_s30 = smov [#allocation6]   ;;  %s571_s13 = scalar_lea.hbm %s979_s1, 64 }
   0x6   :  { %s37_s10 = sshll.u32 %s781_s30, 4  ;;  %p572_p0 = scmp.ne.s32.totalorder %s979_s1, %s571_s13  ;;  %s38_s10 = int_to_ptr.vmem [resolvable:$true] %s37_s10 }
   0x7   :  { %p575_p1 = scmp.lt.u32.totalorder %s571_s13, %s979_s1 }
   0x9   :  { %p577_p2 = pnand %p575_p1, %p572_p0 }
   0xb   :  { %580 = shalt.err (!%p577_p2)
}
   0xc   :  { %s581_s18 = scalar_lea.vmem %s38_s10, 64  ;;  %p586_p4 = scmp.lt.s32.totalorder %s38_s10, %s38_s10 }
   0xd   :  { %p582_p3 = scmp.ne.s32.totalorder %s38_s10, %s581_s18  ;;  %p587_p5 = scmp.lt.s32.totalorder %s581_s18, %s581_s18 }
   0xf   :  { %p588_p6 = por %p587_p5, %p586_p4 }
  0x11   :  { %p589_p7 = pnand %p588_p6, %p582_p3 }
  0x13   :  { %592 = shalt.err (!%p589_p7)
}
  0x14   :  { %40 = dma.hbm_to_vmem [thread:$0]  %s979_s1, 64, %s38_s10, [#allocation7]  }
  0x15   :  { %s782_s21 = smov [#allocation9]   ;;  %s783_s23 = smov [#allocation12]  }
  0x16   :  { %s58_s22 = sshll.u32 %s782_s21, 4  ;;  %s82_s24 = sshll.u32 %s783_s23, 4  ;;  %s59_s22 = int_to_ptr.vmem [resolvable:$true] %s58_s22  ;;  %s83_s24 = int_to_ptr.vmem [resolvable:$true] %s82_s24 }
  0x17   :  { %s593_s27 = scalar_lea.hbm %s981_s3, 256 }
  0x18   :  { %p594_p8 = scmp.ne.s32.totalorder %s981_s3, %s593_s27  ;;  %p597_p9 = scmp.lt.u32.totalorder %s593_s27, %s981_s3 }
  0x1a   :  { %p599_p10 = pnand %p597_p9, %p594_p8 }
  0x1c   :  { %602 = shalt.err (!%p599_p10)
}
  0x1d   :  { %s603_s1 = scalar_lea.vmem %s59_s22, 256  ;;  %p608_p12 = scmp.lt.s32.totalorder %s59_s22, %s59_s22 }
  0x1e   :  { %p604_p11 = scmp.ne.s32.totalorder %s59_s22, %s603_s1  ;;  %p609_p13 = scmp.lt.s32.totalorder %s603_s1, %s603_s1 }
  0x20   :  { %p610_p0 = por %p609_p13, %p608_p12 }
  0x22   :  { %p611_p1 = pnand %p610_p0, %p604_p11 }
  0x24   :  { %614 = shalt.err (!%p611_p1)
}
  0x25   :  { %s784_s10 = smov 64   ;;  %s785_s12 = smov 4  }
  0x26   :  { %64 = dma.hbm_to_vmem [thread:$0]  %s981_s3, 256, %s59_s22, [#allocation10], %s784_s10, %s784_s10, %s785_s12  }
  0x27   :  { %s615_s17 = scalar_lea.hbm %s983_s5, 256 }
  0x28   :  { %p616_p2 = scmp.ne.s32.totalorder %s983_s5, %s615_s17  ;;  %p619_p3 = scmp.lt.u32.totalorder %s615_s17, %s983_s5 }
  0x2a   :  { %p621_p4 = pnand %p619_p3, %p616_p2 }
  0x2c   :  { %624 = shalt.err (!%p621_p4)
}
  0x2d   :  { %s625_s23 = scalar_lea.vmem %s83_s24, 256  ;;  %p630_p6 = scmp.lt.s32.totalorder %s83_s24, %s83_s24 }
  0x2e   :  { %p626_p5 = scmp.ne.s32.totalorder %s83_s24, %s625_s23  ;;  %p631_p7 = scmp.lt.s32.totalorder %s625_s23, %s625_s23 }
  0x30   :  { %p632_p8 = por %p631_p7, %p630_p6 }
  0x32   :  { %p633_p9 = pnand %p632_p8, %p626_p5 }
  0x34   :  { %636 = shalt.err (!%p633_p9)
}
  0x35   :  { %88 = dma.hbm_to_vmem [thread:$0]  %s983_s5, 256, %s83_s24, [#allocation13], %s784_s10, %s784_s10, %s785_s12  }
  0x36   :  { %s786_s25 = smov [#allocation3]   ;;  %s787_s27 = smov [#allocation8]  }
  0x37   :  { %s27_s26 = sshll.u32 %s786_s25, 4  ;;  %s46_s28 = sshll.u32 %s787_s27, 4  ;;  %s28_s26 = int_to_ptr.vmem [resolvable:$true] %s27_s26  ;;  %s47_s28 = int_to_ptr.vmem [resolvable:$true] %s46_s28 }
  0x38   :  { %s637_s11 = scalar_lea.hbm %s978_s0, 64 }
  0x39   :  { %p638_p10 = scmp.ne.s32.totalorder %s978_s0, %s637_s11  ;;  %p641_p11 = scmp.lt.u32.totalorder %s637_s11, %s978_s0 }
  0x3b   :  { %p643_p12 = pnand %p641_p11, %p638_p10 }
  0x3d   :  { %646 = shalt.err (!%p643_p12)
}
  0x3e   :  { %s647_s5 = scalar_lea.vmem %s28_s26, 64  ;;  %p652_p0 = scmp.lt.s32.totalorder %s28_s26, %s28_s26 }
  0x3f   :  { %p648_p13 = scmp.ne.s32.totalorder %s28_s26, %s647_s5  ;;  %p653_p1 = scmp.lt.s32.totalorder %s647_s5, %s647_s5 }
  0x41   :  { %p654_p2 = por %p653_p1, %p652_p0 }
  0x43   :  { %p655_p3 = pnand %p654_p2, %p648_p13 }
  0x45   :  { %658 = shalt.err (!%p655_p3)
}
  0x46   :  { %30 = dma.hbm_to_vmem [thread:$0]  %s978_s0, 64, %s28_s26, [#allocation4]  }
  0x47   :  { %s659_s19 = scalar_lea.hbm %s980_s2, 256 }
  0x48   :  { %p660_p4 = scmp.ne.s32.totalorder %s980_s2, %s659_s19  ;;  %p663_p5 = scmp.lt.u32.totalorder %s659_s19, %s980_s2 }
  0x4a   :  { %p665_p6 = pnand %p663_p5, %p660_p4 }
  0x4c   :  { %668 = shalt.err (!%p665_p6)
}
  0x4d   :  { %s669_s22 = scalar_lea.vmem %s47_s28, 256  ;;  %p674_p8 = scmp.lt.s32.totalorder %s47_s28, %s47_s28 }
  0x4e   :  { %p670_p7 = scmp.ne.s32.totalorder %s47_s28, %s669_s22  ;;  %p675_p9 = scmp.lt.s32.totalorder %s669_s22, %s669_s22 }
  0x50   :  { %p676_p10 = por %p675_p9, %p674_p8 }
  0x52   :  { %p677_p11 = pnand %p676_p10, %p670_p7 }
  0x54   :  { %680 = shalt.err (!%p677_p11)
}
  0x55   :  { %52 = dma.hbm_to_vmem [thread:$0]  %s980_s2, 256, %s47_s28, [#allocation7], %s784_s10, %s784_s10, %s785_s12  }
  0x56   :  { %s788_s26 = smov [#allocation11]   ;;  %s681_s11 = scalar_lea.hbm %s982_s4, 512 }
  0x57   :  { %s70_s27 = sshll.u32 %s788_s26, 4  ;;  %p682_p12 = scmp.ne.s32.totalorder %s982_s4, %s681_s11  ;;  %s71_s27 = int_to_ptr.vmem [resolvable:$true] %s70_s27 }
  0x58   :  { %p685_p13 = scmp.lt.u32.totalorder %s681_s11, %s982_s4 }
  0x5a   :  { %p687_p0 = pnand %p685_p13, %p682_p12 }
  0x5c   :  { %690 = shalt.err (!%p687_p0)
}
  0x5d   :  { %s691_s5 = scalar_lea.vmem %s71_s27, 512  ;;  %p696_p2 = scmp.lt.s32.totalorder %s71_s27, %s71_s27 }
  0x5e   :  { %p692_p1 = scmp.ne.s32.totalorder %s71_s27, %s691_s5  ;;  %p697_p3 = scmp.lt.s32.totalorder %s691_s5, %s691_s5 }
  0x60   :  { %p698_p4 = por %p697_p3, %p696_p2 }
  0x62   :  { %p699_p5 = pnand %p698_p4, %p692_p1 }
  0x64   :  { %702 = shalt.err (!%p699_p5)
}
  0x65   :  { %s789_s2 = smov 128   ;;  %s790_s10 = smov 8  }
  0x66   :  { %76 = dma.hbm_to_vmem [thread:$0]  %s982_s4, 512, %s71_s27, [#allocation10], %s789_s2, %s789_s2, %s790_s10  }
  0x67   :  { %s791_s24 = smov [#allocation14]   ;;  %s792_s17 = smov [#allocation15]  }
  0x68   :  { %s94_s16 = sshll.u32 %s791_s24, 4  ;;  %s107_s18 = sshll.u32 %s792_s17, 4  ;;  %s95_s16 = int_to_ptr.vmem [resolvable:$true] %s94_s16  ;;  %s108_s18 = int_to_ptr.vmem [resolvable:$true] %s107_s18 }
  0x69   :  { %s703_s21 = scalar_lea.hbm %s984_s6, 512 }
  0x6a   :  { %p704_p6 = scmp.ne.s32.totalorder %s984_s6, %s703_s21  ;;  %p707_p7 = scmp.lt.u32.totalorder %s703_s21, %s984_s6 }
  0x6c   :  { %p709_p8 = pnand %p707_p7, %p704_p6 }
  0x6e   :  { %712 = shalt.err (!%p709_p8)
}
  0x6f   :  { %s713_s4 = scalar_lea.vmem %s95_s16, 512  ;;  %p718_p10 = scmp.lt.s32.totalorder %s95_s16, %s95_s16 }
  0x70   :  { %p714_p9 = scmp.ne.s32.totalorder %s95_s16, %s713_s4  ;;  %p719_p11 = scmp.lt.s32.totalorder %s713_s4, %s713_s4 }
  0x72   :  { %p720_p12 = por %p719_p11, %p718_p10 }
  0x74   :  { %p721_p13 = pnand %p720_p12, %p714_p9 }
  0x76   :  { %724 = shalt.err (!%p721_p13)
}
  0x77   :  { %100 = dma.hbm_to_vmem [thread:$0]  %s984_s6, 512, %s95_s16, [#allocation13], %s789_s2, %s789_s2, %s790_s10  }
  0x78   :  { %s725_s30 = scalar_lea.hbm %s985_s7, 16 }
  0x79   :  { %p726_p0 = scmp.ne.s32.totalorder %s985_s7, %s725_s30  ;;  %p729_p1 = scmp.lt.u32.totalorder %s725_s30, %s985_s7 }
  0x7b   :  { %p731_p2 = pnand %p729_p1, %p726_p0 }
  0x7d   :  { %734 = shalt.err (!%p731_p2)
}
  0x7e   :  { %s735_s15 = scalar_lea.vmem %s108_s18, 16  ;;  %s739_s5 = scalar_lea.vmem %s108_s18, 32 }
  0x7f   :  { %p736_p3 = scmp.ne.s32.totalorder %s108_s18, %s735_s15  ;;  %p740_p4 = scmp.lt.s32.totalorder %s108_s18, %s108_s18 }
  0x80   :  { %p741_p5 = scmp.lt.s32.totalorder %s739_s5, %s735_s15 }
  0x82   :  { %p742_p6 = por %p741_p5, %p740_p4 }
  0x84   :  { %p743_p7 = pnand %p742_p6, %p736_p3 }
  0x86   :  { %746 = shalt.err (!%p743_p7)
}
  0x87   :  { %110 = dma.hbm_to_vmem [thread:$0]  %s985_s7, 16, %s108_s18, [#allocation16]  }
  0x88   :  { %769 = dma.done.wait [#allocation4], 64  }
  0x89   :  { %770 = vsyncadd [#allocation4], 4294967232 }
  0x8a   :  { %771 = dma.done.wait [#allocation7], 320  }
  0x8b   :  { %772 = vsyncadd [#allocation7], 4294966976 }
  0x8c   :  { %773 = dma.done.wait [#allocation10], 768  }
  0x8d   :  { %774 = vsyncadd [#allocation10], 4294966528 }
  0x8e   :  { %775 = dma.done.wait [#allocation13], 768  }
  0x8f   :  { %776 = vsyncadd [#allocation13], 4294966528 }
  0x90   :  { %777 = dma.done.wait [#allocation16], 16  }
  0x91   :  { %778 = vsyncadd [#allocation16], 4294967280  ;;  %v793_v0 = vmov 0   ;;  %vm212_vm0 = vcmask 31744   ;;  %vm281_vm1 = vcmask 105472   ;;  %v565_v3 = vld [vmem:[#allocation9] sm:$0xff]   ;;  %v422_v57 = vstv %s986_s8 }
  0x92   :  { %563 = vset.pattern.permute.xlu0 %v793_v0  ;;  %564 = vset.pattern.permute.xlu1 %v793_v0  ;;  %v201_v1 = vld [vmem:[#allocation6] sm:$0xf]  ;;  %v200_v4 = vld [vmem:[#allocation3] sm:$0xf]  ;;  %v151_v5 = vld [vmem:[#allocation11] sm:$0xff]  ;;  %vm360_vm2 = vcmask 261120  }
  0x93   :  { %545 = vmatprep.subr.msk.bf16.mxu0 %vm212_vm0, %v201_v1  ;;  %v220_v2 = vsel %vm212_vm0, %v201_v1, 0  ;;  %515 = vmatprep.mubr.msk.bf16.mxu0 %vm212_vm0, %v565_v3  ;;  %v566_v6 = vld [vmem:[#allocation9 + $0x8] sm:$0xff]   ;;  %v153_v7 = vld [vmem:[#allocation11 + $0x10] sm:$0xff]  ;;  %v567_v8 = vld [vmem:[#allocation8] sm:$0xff]   ;;  %v289_v10 = vsel %vm281_vm1, %v200_v4, 0  ;;  %v794_v37 = vmov 0.0  }
  0x94   :  { %514 = vmatpush3.bf16.xpose.msra.mxu0 %v220_v2  ;;  %157 = vperm.xlu0 %563, %v151_v5   ;;  %v152_v9 = vld [vmem:[#allocation11 + $0x8] sm:$0xff]  ;;  %v154_v11 = vld [vmem:[#allocation11 + $0x18] sm:$0xff]  ;;  %v175_v12 = vld [vmem:[#allocation14] sm:$0xff]  ;;  %vm795_vm3 = vmmov 0   ;;  %s796_s12 = smov [#allocation17]   ;;  %vm466_vm4 = vcmask 57344  }
  0x95   :  { %546 = vmatprep.subr.msk.bf16.mxu0 %vm281_vm1, %v200_v4  ;;  %167 = vperm.xlu1 %564, %v153_v7   ;;  %v176_v13 = vld [vmem:[#allocation14 + $0x8] sm:$0xff]  ;;  %v177_v14 = vld [vmem:[#allocation14 + $0x10] sm:$0xff]  ;;  %v178_v15 = vld [vmem:[#allocation14 + $0x18] sm:$0xff]  ;;  %s474_s28 = sshll.u32 %s796_s12, 4  ;;  %s475_s28 = int_to_ptr.vmem [resolvable:$true] %s474_s28 }
  0x96   :  { %v568_v16 = vld [vmem:[#allocation8 + $0x8] sm:$0xff]   ;;  %v569_v17 = vld [vmem:[#allocation12] sm:$0xff]   ;;  %v150_v56 = vld [vmem:[#allocation15] sm:$0x1]  ;;  %s747_s24 = scalar_lea.vmem %s475_s28, 16  ;;  %s751_s16 = scalar_lea.vmem %s475_s28, 32 }
  0x97   :  { %529 = vmatprep.mubr.msk.bf16.mxu1 %vm360_vm2, %v569_v17  ;;  %v570_v36 = vld [vmem:[#allocation12 + $0x8] sm:$0xff]   ;;  %p748_p8 = scmp.ne.s32.totalorder %s475_s28, %s747_s24  ;;  %p752_p9 = scmp.lt.s32.totalorder %s475_s28, %s475_s28 }
  0x98   :  { %162 = vperm.xlu0 %563, %v152_v9   ;;  %p753_p10 = scmp.lt.s32.totalorder %s751_s16, %s747_s24 }
  0x99   :  { %172 = vperm.xlu1 %564, %v154_v11  }
  0x9a   :  { %p754_p11 = por %p753_p10, %p752_p9 }
  0x9b   :  { %516 = vmatmul.mubr.msk.bf16.vlgmr.msra.gmra.mrb[0].mxu0 %vm212_vm0, %v566_v6 }
  0x9c   :  { %520 = vmatpush3.bf16.xpose.msra.mxu0 %v289_v10  ;;  %521 = vmatprep.mubr.msk.bf16.mxu0 %vm281_vm1, %v567_v8  ;;  %p755_p12 = pnand %p754_p11, %p748_p8 }
  0x9d   :  { %181 = vperm.xlu0 %563, %v175_v12   ;;  %186 = vperm.xlu1 %564, %v176_v13  }
  0xa1   :  { %191 = vperm.xlu0 %563, %v177_v14   ;;  %196 = vperm.xlu1 %564, %v178_v15  }
  0xa7   :  { %522 = vmatmul.mubr.msk.bf16.vlgmr.msra.gmra.mrb[0].mxu0 %vm281_vm1, %v568_v16 }
 0x113   :  { %v158_v19 = vpop.permute.xlu0 %157 }
 0x114   :  { %v168_v18 = vpop.permute.xlu1 %167 }
 0x117   :  { %v163_v26 = vpop.permute.xlu0 %162 }
 0x118   :  { %v173_v23 = vpop.permute.xlu1 %172 }
 0x11c   :  { %v182_v38 = vpop.permute.xlu0 %181  ;;  %v187_v39 = vpop.permute.xlu1 %186 }
 0x120   :  { %v192_v40 = vpop.permute.xlu0 %191  ;;  %v197_v44 = vpop.permute.xlu1 %196 }
 0x17a   :  { %v523_v20 = vpop.f32.mrb[0].mxu0 }
 0x17b   :  { %v342_v21 = vadd.f32 %v523_v20, %v168_v18  ;;  %v325_v22 = vpop.f32.mrb[1].mxu0 }
 0x17c   :  { %v340_v24 = vadd.f32 %v325_v22, %v158_v19  ;;  %v524_v25 = vpop.f32.mrb[2].mxu0 }
 0x17d   :  { %v343_v27 = vadd.f32 %v524_v25, %v173_v23  ;;  %v328_v28 = vpop.f32.mrb[3].mxu0  ;;  %v346_v30 = vmax.f32 %v342_v21, 0.0 }
 0x17e   :  { %v341_v29 = vadd.f32 %v328_v28, %v163_v26  ;;  %v344_v32 = vmax.f32 %v340_v24, 0.0 }
 0x17f   :  { %v347_v31 = vmax.f32 %v343_v27, 0.0 }
 0x180   :  { %v345_v33 = vmax.f32 %v341_v29, 0.0 }
 0x181   :  { %v349_v34 = vpack.c.bf16 %v347_v31, %v346_v30 }
 0x182   :  { %v348_v35 = vpack.c.bf16 %v345_v33, %v344_v32 }
 0x184   :  { %525 = vmatprep.subr.bf16.mxu1 %v348_v35 }
 0x185   :  { %526 = vmatpush3.bf16.msra.mxu1 %v348_v35 }
 0x186   :  { %527 = vmatprep.subr.bf16.mxu1 %v349_v34 }
 0x189   :  { %528 = vmatpush3.bf16.msra.mxu1 %v349_v34 }
 0x18a   :  { %533 = vmatprep.subr.bf16.mxu1 %v794_v37 }
 0x18c   :  { %530 = vmatmul.mubr.msk.bf16.vlgmr.msra.gmra.mrb[0].mxu1 %vm360_vm2, %v570_v36 }
 0x18d   :  { %537 = vmatprep.mubr.msk.bf16.mxu1 %vm795_vm3, %v794_v37 }
 0x25f   :  { %v531_v41 = vpop.f32.mrb[0].mxu1 }
 0x260   :  { %v410_v42 = vadd.f32 %v531_v41, %v192_v40  ;;  %v401_v43 = vpop.f32.mrb[1].mxu1 }
 0x261   :  { %v402_v45 = vadd.f32 %v401_v43, %v182_v38  ;;  %v532_v46 = vpop.f32.mrb[2].mxu1 }
 0x262   :  { %v413_v47 = vadd.f32 %v532_v46, %v197_v44  ;;  %v404_v48 = vpop.f32.mrb[3].mxu1  ;;  %v418_v50 = vmax.f32 %v410_v42, 0.0 }
 0x263   :  { %v405_v49 = vadd.f32 %v404_v48, %v187_v39  ;;  %v416_v52 = vmax.f32 %v402_v45, 0.0 }
 0x264   :  { %v419_v51 = vmax.f32 %v413_v47, 0.0 }
 0x265   :  { %v417_v53 = vmax.f32 %v405_v49, 0.0 }
 0x266   :  { %v421_v54 = vpack.c.bf16 %v419_v51, %v418_v50 }
 0x267   :  { %v420_v55 = vpack.c.bf16 %v417_v53, %v416_v52 }
 0x269   :  { %534 = vmatpush3.bf16.msra.mxu1 %v420_v55 }
 0x26a   :  { %535 = vmatprep.subr.bf16.mxu1 %v794_v37 }
 0x26d   :  { %536 = vmatpush3.bf16.msra.mxu1 %v421_v54 }
 0x270   :  { %538 = vmatmul.mubr.msk.bf16.vlgmr.msra.gmra.mrb[4].mxu1 %vm360_vm2, %v150_v56 }
 0x343   :  { %v460_v58 = vpop.f32.mrb[4].mxu1 }
 0x344   :  { %v461_v59 = vadd.f32 %v460_v58, %v422_v57  ;;  %v539_v60 = vpop.f32.mrb[5].mxu1 }
 0x345   :  { %v463_v61 = vpop.f32.mrb[6].mxu1 }
 0x346   :  { %v540_v62 = vpop.f32.mrb[7].mxu1  ;;  %467 = vst.msk [vmem:[#allocation17] sm:$0x1] %vm466_vm4, %v461_v59 }
 0x347   :  { %758 = shalt.err (!%p755_p12)
}
 0x348   :  { %s759_s18 = scalar_lea.hbm %s987_s9, 16 }
 0x349   :  { %p760_p13 = scmp.ne.s32.totalorder %s987_s9, %s759_s18  ;;  %p763_p0 = scmp.lt.u32.totalorder %s759_s18, %s987_s9 }
 0x34b   :  { %p765_p1 = pnand %p763_p0, %p760_p13 }
 0x34d   :  { %768 = shalt.err (!%p765_p1)
}
 0x34e   :  { %477 = dma.vmem_to_hbm [thread:$0]  %s475_s28, 16, %s987_s9, [#allocation5]  }
 0x34f   :  { %779 = dma.done.wait [#allocation5], 16  }
 0x350   :  { %780 = vsyncadd [#allocation5], 4294967280 }
 0x351   :  { %481 = vsyncpa [#allocation4], 1 }
 0x352   :  { %482 = vsyncpa [#allocation7], 1 }
 0x353   :  { %483 = vsyncpa [#allocation10], 1 }
 0x354   :  { %484 = vsyncpa [#allocation13], 1 }
 0x355   :  { %485 = vsyncpa [#allocation16], 1 }
 0x356   :  { %486 = vsyncpa [#allocation5], 1 }

</bundles_post_ra>
